<compile_context>
chip_gen: v7x
topology: tpu7x:2x2x1
jax: 0.10.0
libtpu: 0.0.40
codegen_flags: <defaults>
</compile_context>

<pallas_src>
import jax
import jax.numpy as jnp
import numpy as np
from jax.experimental import pallas as pl
from jax.experimental.pallas import tpu as pltpu

BN_EPS = 1e-5


def _round_up(x, m):
    return ((x + m - 1) // m) * m


def _mlp_kernel(xcat_ref, xcont_ref, embw_ref, w1c_ref, w2_ref, w3_ref,
                bias_ref, out_ref):
    """Fused eval-mode forward for one batch tile.

    h1  = relu( onehot(x_cat) @ EW1  +  x_cont @ W1c  + b1 )
    h2  = relu( h1 @ W2f + b2 )
    out =        h2 @ W3f + b3
    (BatchNorms + embedding tables pre-folded into EW1/W1c/W2f/W3f on host.)
    """
    tb = xcat_ref.shape[0]
    ncat = xcat_ref.shape[1]
    total_cats = embw_ref.shape[0]
    h1p = embw_ref.shape[1]
    h2p = w2_ref.shape[1]
    nc = w3_ref.shape[1]

    # ---- embedding lookup as a one-hot MXU matmul (indices pre-offset) ----
    cat = xcat_ref[...]                                          # (tb, ncat) i32
    iota = jax.lax.broadcasted_iota(jnp.int32, (tb, total_cats), 1)
    oh = (iota == cat[:, 0:1])
    for i in range(1, ncat):
        oh = jnp.logical_or(oh, iota == cat[:, i:i + 1])
    oh = oh.astype(embw_ref.dtype)                               # (tb, total_cats)

    h1 = jnp.dot(oh, embw_ref[...], preferred_element_type=jnp.float32)
    h1 = h1 + jnp.dot(xcont_ref[...], w1c_ref[...],
                      preferred_element_type=jnp.float32)
    h1 = jnp.maximum(h1 + bias_ref[0:1, :h1p], 0.0)              # f32 (tb, h1p)

    h2 = jnp.dot(h1.astype(w2_ref.dtype), w2_ref[...],
                 preferred_element_type=jnp.float32)
    h2 = jnp.maximum(h2 + bias_ref[1:2, :h2p], 0.0)              # f32 (tb, h2p)

    out = jnp.dot(h2.astype(w3_ref.dtype), w3_ref[...],
                  preferred_element_type=jnp.float32)
    out_ref[...] = (out + bias_ref[2:3, :nc]).astype(out_ref.dtype)


def pretrain_forward(x_cat, x_cont, params, *,
                     compute_dtype=jnp.bfloat16, batch_tile=2048):
    """Forward pass of PretrainModel (eval mode)."""
    emb_tables = params["emb_tables"]
    n_emb = sum(int(t.shape[1]) for t in emb_tables)
    n_cont = int(x_cont.shape[1])
    n_cat = int(x_cat.shape[1])
    B = int(x_cat.shape[0])
    n_hidden1 = int(params["w1"].shape[1])
    n_hidden2 = int(params["w2"].shape[1])
    n_classes = int(params["w3"].shape[1])

    # --- host-side eval-mode BatchNorm folding (tiny) ------------------------
    s1 = params["bn1_g"] * jax.lax.rsqrt(params["bn1_v"] + BN_EPS)   # (1, n_cont)
    s2 = params["bn2_g"] * jax.lax.rsqrt(params["bn2_v"] + BN_EPS)   # (1, 200)
    s3 = params["bn3_g"] * jax.lax.rsqrt(params["bn3_v"] + BN_EPS)   # (1, 70)

    w1a = params["w1"][:n_emb, :]            # embedding rows of W1
    w1b = params["w1"][n_emb:, :]            # continuous rows of W1
    w1c_f = w1b * s1.reshape(n_cont, 1)
    b1_f = params["b1"] + (params["bn1_b"] - params["bn1_m"] * s1) @ w1b

    # Embedding tables folded through W1:  E_i @ W1a[rows_i], concatenated.
    folded = []
    off = 0
    for tbl in emb_tables:
        sz = int(tbl.shape[1])
        folded.append(tbl.astype(jnp.float32) @ w1a[off:off + sz, :])
        off += sz
    emb_w_f = jnp.concatenate(folded, axis=0)          # (total_cats, n_hidden1)
    total_cats = int(emb_w_f.shape[0])
    cat_offsets = np.concatenate(
        [[0], np.cumsum([int(t.shape[0]) for t in emb_tables])[:-1]]
    ).astype(np.int32)                                  # per-feature column offset

    w2_f = params["w2"] * s2.reshape(n_hidden1, 1)
    b2_f = params["b2"] + (params["bn2_b"] - params["bn2_m"] * s2) @ params["w2"]
    w3_f = params["w3"] * s3.reshape(n_hidden2, 1)
    b3_f = params["b3"] + (params["bn3_b"] - params["bn3_m"] * s3) @ params["w3"]

    # --- pad only the hidden dims to multiples of 128 (lane-dense matmuls) ---
    h1_pad = _round_up(n_hidden1, 128)       # 200 -> 256
    h2_pad = _round_up(n_hidden2, 128)       # 70  -> 128
    bias_w = max(h1_pad, h2_pad, n_classes)  # 256

    def pad2(a, rows, cols):
        return jnp.pad(a, ((0, rows - a.shape[0]), (0, cols - a.shape[1])))

    emb_w_p = pad2(emb_w_f, total_cats, h1_pad).astype(compute_dtype)
    w1c_p = pad2(w1c_f, n_cont, h1_pad).astype(compute_dtype)
    w2_p = pad2(w2_f, h1_pad, h2_pad).astype(compute_dtype)
    w3_p = pad2(w3_f, h2_pad, n_classes).astype(compute_dtype)
    bias_pack = jnp.concatenate(
        [pad2(b1_f, 1, bias_w), pad2(b2_f, 1, bias_w), pad2(b3_f, 1, bias_w)],
        axis=0).astype(jnp.float32)                         # (3, bias_w) f32

    # --- batch tiling: cap tile so the grid has >=2 steps when B allows -----
    tb = min(int(batch_tile), _round_up((B + 1) // 2, 16))
    tb = _round_up(max(tb, 16), 16)          # sublane-safe for f32 and bf16
    b_pad = _round_up(B, tb)

    xcat_adj = (x_cat.astype(jnp.int32)
                + jnp.asarray(cat_offsets, jnp.int32)[None, :])
    xcat_adj = jnp.pad(xcat_adj, ((0, b_pad - B), (0, 0)))          # (b_pad, n_cat)
    xcont_in = jnp.pad(x_cont.astype(compute_dtype), ((0, b_pad - B), (0, 0)))

    grid = (b_pad // tb,)

    out_full = pl.pallas_call(
        _mlp_kernel,
        out_shape=jax.ShapeDtypeStruct((b_pad, n_classes), jnp.float32),
        grid=grid,
        in_specs=[
            pl.BlockSpec((tb, n_cat), lambda i: (i, 0)),        # int32 indices (tiled)
            pl.BlockSpec((tb, n_cont), lambda i: (i, 0)),       # continuous feats (tiled)
            pl.BlockSpec((total_cats, h1_pad), lambda i: (0, 0)),  # weights stay resident
            pl.BlockSpec((n_cont, h1_pad), lambda i: (0, 0)),
            pl.BlockSpec((h1_pad, h2_pad), lambda i: (0, 0)),
            pl.BlockSpec((h2_pad, n_classes), lambda i: (0, 0)),
            pl.BlockSpec((3, bias_w), lambda i: (0, 0)),
        ],
        out_specs=pl.BlockSpec((tb, n_classes), lambda i: (i, 0)),
        compiler_params=pltpu.CompilerParams(
            dimension_semantics=("parallel",),   # rows independent -> v7x 2-TC shard
            vmem_limit_bytes=32 * 1024 * 1024,
        ),
    )(xcat_adj, xcont_in, emb_w_p, w1c_p, w2_p, w3_p, bias_pack)

    return out_full[:B]


def _reference_forward(x_cat, x_cont, params):
    """Pure-JAX reference (eval-mode PretrainModel.forward, unfolded BN)."""
    embs = [jnp.take(tbl, x_cat[:, i], axis=0)
            for i, tbl in enumerate(params["emb_tables"])]
    x = jnp.concatenate(embs, axis=1).astype(jnp.float32)
    xc = x_cont.astype(jnp.float32)
    x2 = (xc - params["bn1_m"]) / jnp.sqrt(params["bn1_v"] + BN_EPS)
    x2 = x2 * params["bn1_g"] + params["bn1_b"]
    x = jnp.concatenate([x, x2], axis=1)
    h = jnp.maximum(x @ params["w1"] + params["b1"], 0.0)
    h = (h - params["bn2_m"]) / jnp.sqrt(params["bn2_v"] + BN_EPS)
    h = h * params["bn2_g"] + params["bn2_b"]
    h = jnp.maximum(h @ params["w2"] + params["b2"], 0.0)
    h = (h - params["bn3_m"]) / jnp.sqrt(params["bn3_v"] + BN_EPS)
    h = h * params["bn3_g"] + params["bn3_b"]
    return h @ params["w3"] + params["b3"]


def init_params(key, embedding_sizes, n_cont, n_classes):
    n_emb = sum(sz for _, sz in embedding_sizes)
    d_in = n_emb + n_cont
    keys = iter(jax.random.split(key, 32))

    def lin(k, fan_in, fan_out):
        bound = 1.0 / np.sqrt(fan_in)
        return jax.random.uniform(k, (fan_in, fan_out), jnp.float32, -bound, bound)

    def bn(k, n):
        k1, k2, k3 = jax.random.split(k, 3)
        g = 1.0 + 0.1 * jax.random.normal(k1, (1, n), jnp.float32)
        b = 0.1 * jax.random.normal(k2, (1, n), jnp.float32)
        m = 0.1 * jax.random.normal(k3, (1, n), jnp.float32)
        v = jnp.full((1, n), 1.0, jnp.float32)
        return g, b, m, v

    params = {}
    params["emb_tables"] = [
        jax.random.normal(next(keys), (cats, sz), jnp.float32)
        for cats, sz in embedding_sizes
    ]
    params["w1"] = lin(next(keys), d_in, 200)
    params["b1"] = 0.01 * jax.random.normal(next(keys), (1, 200), jnp.float32)
    params["w2"] = lin(next(keys), 200, 70)
    params["b2"] = 0.01 * jax.random.normal(next(keys), (1, 70), jnp.float32)
    params["w3"] = lin(next(keys), 70, n_classes)
    params["b3"] = 0.01 * jax.random.normal(next(keys), (1, n_classes), jnp.float32)
    (params["bn1_g"], params["bn1_b"], params["bn1_m"], params["bn1_v"]) = bn(next(keys), n_cont)
    (params["bn2_g"], params["bn2_b"], params["bn2_m"], params["bn2_v"]) = bn(next(keys), 200)
    (params["bn3_g"], params["bn3_b"], params["bn3_m"], params["bn3_v"]) = bn(next(keys), 70)
    return params


if __name__ == "__main__":
    key = jax.random.PRNGKey(0)
    k_par, k_cat, k_cont = jax.random.split(key, 3)

    embedding_sizes = [(10, 5), (8, 3), (6, 4)]   # -> n_emb = 12, total_cats = 24
    n_cont = 4
    n_classes = 5
    batch = 48                                    # small, exercises a 2-step grid

    params = init_params(k_par, embedding_sizes, n_cont, n_classes)

    x_cat = jnp.stack(
        [jax.random.randint(jax.random.fold_in(k_cat, i), (batch,), 0, cats)
         for i, (cats, _) in enumerate(embedding_sizes)],
        axis=1,
    ).astype(jnp.int32)                           # (batch, n_cat_features)
    x_cont = jax.random.normal(k_cont, (batch, n_cont), jnp.float32)

    ref = _reference_forward(x_cat, x_cont, params)

    # f32 MXU-input path (tighter tolerance; validates BN + embedding folding).
    out_f32 = pretrain_forward(x_cat, x_cont, params, compute_dtype=jnp.float32)
    out_f32 = jax.block_until_ready(out_f32)
    assert out_f32.shape == (batch, n_classes)
    np.testing.assert_allclose(np.asarray(out_f32), np.asarray(ref),
                               rtol=2e-2, atol=2e-2)

    # Default bf16 MXU-input path (f32 accumulation, f32 bias/ReLU epilogue).
    out = pretrain_forward(x_cat, x_cont, params)
    out = jax.block_until_ready(out)
    assert out.shape == (batch, n_classes)
    np.testing.assert_allclose(np.asarray(out), np.asarray(ref),
                               rtol=1e-1, atol=1e-1)

    print("KERNEL_OK")
</pallas_src>

<mosaic_0001>
module attributes {stable_mosaic.version = 11 : i64} {
  func.func @_mlp_kernel(%arg0: i32, %arg1: memref<32x3xi32, #tpu.memory_space<vmem>>, %arg2: memref<32x4xf32, #tpu.memory_space<vmem>>, %arg3: memref<24x256xf32, #tpu.memory_space<vmem>>, %arg4: memref<4x256xf32, #tpu.memory_space<vmem>>, %arg5: memref<256x128xf32, #tpu.memory_space<vmem>>, %arg6: memref<128x5xf32, #tpu.memory_space<vmem>>, %arg7: memref<3x256xf32, #tpu.memory_space<vmem>>, %arg8: memref<32x5xf32, #tpu.memory_space<vmem>>) attributes {dimension_semantics = [#tpu.dimension_semantics<parallel>], iteration_bounds = array<i64: 2>, scalar_prefetch = 0 : i64, scratch_operands = 0 : i64, tpu.core_type = #tpu.core_type<tc>, window_params = [{transform_indices = @transform_0, window_bounds = array<i64: 32, 3>}, {transform_indices = @transform_1, window_bounds = array<i64: 32, 4>}, {pipeline_mode = #tpu.pipeline_mode<synchronous>, transform_indices = @transform_2, window_bounds = array<i64: 24, 256>}, {pipeline_mode = #tpu.pipeline_mode<synchronous>, transform_indices = @transform_3, window_bounds = array<i64: 4, 256>}, {pipeline_mode = #tpu.pipeline_mode<synchronous>, transform_indices = @transform_4, window_bounds = array<i64: 256, 128>}, {pipeline_mode = #tpu.pipeline_mode<synchronous>, transform_indices = @transform_5, window_bounds = array<i64: 128, 5>}, {pipeline_mode = #tpu.pipeline_mode<synchronous>, transform_indices = @transform_6, window_bounds = array<i64: 3, 256>}, {transform_indices = @transform_7, window_bounds = array<i64: 32, 5>}]} {
    %c0 = arith.constant 0 : index
    %c0_0 = arith.constant 0 : index
    %0 = vector.load %arg1[%c0, %c0_0] : memref<32x3xi32, #tpu.memory_space<vmem>>, vector<32x3xi32>
    %1 = tpu.iota {dimensions = array<i32: 1>} : vector<32x24xi32>
    %2 = vector.extract_strided_slice %0 {offsets = [0, 0], sizes = [32, 1], strides = [1, 1]} : vector<32x3xi32> to vector<32x1xi32>
    %3 = vector.broadcast %2 : vector<32x1xi32> to vector<32x24xi32>
    %4 = arith.cmpi eq, %1, %3 : vector<32x24xi32>
    %5 = vector.extract_strided_slice %0 {offsets = [0, 1], sizes = [32, 1], strides = [1, 1]} : vector<32x3xi32> to vector<32x1xi32>
    %6 = vector.broadcast %5 : vector<32x1xi32> to vector<32x24xi32>
    %7 = arith.cmpi eq, %1, %6 : vector<32x24xi32>
    %8 = arith.ori %4, %7 : vector<32x24xi1>
    %9 = vector.extract_strided_slice %0 {offsets = [0, 2], sizes = [32, 1], strides = [1, 1]} : vector<32x3xi32> to vector<32x1xi32>
    %10 = vector.broadcast %9 : vector<32x1xi32> to vector<32x24xi32>
    %11 = arith.cmpi eq, %1, %10 : vector<32x24xi32>
    %12 = arith.ori %8, %11 : vector<32x24xi1>
    %13 = arith.extui %12 : vector<32x24xi1> to vector<32x24xi32>
    %14 = arith.sitofp %13 : vector<32x24xi32> to vector<32x24xf32>
    %c0_1 = arith.constant 0 : index
    %c0_2 = arith.constant 0 : index
    %15 = vector.load %arg3[%c0_1, %c0_2] : memref<24x256xf32, #tpu.memory_space<vmem>>, vector<24x256xf32>
    %cst = arith.constant dense<0.000000e+00> : vector<32x256xf32>
    %16 = tpu.matmul %14, %15, %cst {dimension_numbers = #tpu.dot_dimension_numbers<[1], [0], [0], [1], [0, 0, 1, 1], [], []>} : vector<32x24xf32>, vector<24x256xf32>, vector<32x256xf32> -> vector<32x256xf32>
    %c0_3 = arith.constant 0 : index
    %c0_4 = arith.constant 0 : index
    %17 = vector.load %arg2[%c0_3, %c0_4] : memref<32x4xf32, #tpu.memory_space<vmem>>, vector<32x4xf32>
    %c0_5 = arith.constant 0 : index
    %c0_6 = arith.constant 0 : index
    %18 = vector.load %arg4[%c0_5, %c0_6] : memref<4x256xf32, #tpu.memory_space<vmem>>, vector<4x256xf32>
    %cst_7 = arith.constant dense<0.000000e+00> : vector<32x256xf32>
    %19 = tpu.matmul %17, %18, %cst_7 {dimension_numbers = #tpu.dot_dimension_numbers<[1], [0], [0], [1], [0, 0, 1, 1], [], []>} : vector<32x4xf32>, vector<4x256xf32>, vector<32x256xf32> -> vector<32x256xf32>
    %20 = arith.addf %16, %19 : vector<32x256xf32>
    %c0_8 = arith.constant 0 : index
    %c0_9 = arith.constant 0 : index
    %21 = vector.load %arg7[%c0_8, %c0_9] : memref<3x256xf32, #tpu.memory_space<vmem>>, vector<1x256xf32>
    %22 = vector.broadcast %21 : vector<1x256xf32> to vector<32x256xf32>
    %23 = arith.addf %20, %22 : vector<32x256xf32>
    %cst_10 = arith.constant 0.000000e+00 : f32
    %24 = vector.broadcast %cst_10 : f32 to vector<32x256xf32>
    %25 = arith.maximumf %23, %24 : vector<32x256xf32>
    %c0_11 = arith.constant 0 : index
    %c0_12 = arith.constant 0 : index
    %26 = vector.load %arg5[%c0_11, %c0_12] : memref<256x128xf32, #tpu.memory_space<vmem>>, vector<256x128xf32>
    %cst_13 = arith.constant dense<0.000000e+00> : vector<32x128xf32>
    %27 = tpu.matmul %25, %26, %cst_13 {dimension_numbers = #tpu.dot_dimension_numbers<[1], [0], [0], [1], [0, 0, 1, 1], [], []>} : vector<32x256xf32>, vector<256x128xf32>, vector<32x128xf32> -> vector<32x128xf32>
    %c1 = arith.constant 1 : index
    %c0_14 = arith.constant 0 : index
    %28 = vector.load %arg7[%c1, %c0_14] : memref<3x256xf32, #tpu.memory_space<vmem>>, vector<1x128xf32>
    %29 = vector.broadcast %28 : vector<1x128xf32> to vector<32x128xf32>
    %30 = arith.addf %27, %29 : vector<32x128xf32>
    %cst_15 = arith.constant 0.000000e+00 : f32
    %31 = vector.broadcast %cst_15 : f32 to vector<32x128xf32>
    %32 = arith.maximumf %30, %31 : vector<32x128xf32>
    %c0_16 = arith.constant 0 : index
    %c0_17 = arith.constant 0 : index
    %33 = vector.load %arg6[%c0_16, %c0_17] : memref<128x5xf32, #tpu.memory_space<vmem>>, vector<128x5xf32>
    %cst_18 = arith.constant dense<0.000000e+00> : vector<32x5xf32>
    %34 = tpu.matmul %32, %33, %cst_18 {dimension_numbers = #tpu.dot_dimension_numbers<[1], [0], [0], [1], [0, 0, 1, 1], [], []>} : vector<32x128xf32>, vector<128x5xf32>, vector<32x5xf32> -> vector<32x5xf32>
    %c2 = arith.constant 2 : index
    %c0_19 = arith.constant 0 : index
    %35 = vector.load %arg7[%c2, %c0_19] : memref<3x256xf32, #tpu.memory_space<vmem>>, vector<1x5xf32>
    %36 = vector.broadcast %35 : vector<1x5xf32> to vector<32x5xf32>
    %37 = arith.addf %34, %36 : vector<32x5xf32>
    %c0_20 = arith.constant 0 : index
    %c0_21 = arith.constant 0 : index
    %38 = vector.load %arg8[%c0_20, %c0_21] : memref<32x5xf32, #tpu.memory_space<vmem>>, vector<32x5xf32>
    tpu.vector_store %arg8[%c0_20, %c0_21], %37 {strides = array<i32>} : memref<32x5xf32, #tpu.memory_space<vmem>>, vector<32x5xf32>,
    return
  }
  func.func @transform_0(%arg0: i32) -> (i32, i32) {
    %c0_i32 = arith.constant 0 : i32
    %c0_i32_0 = arith.constant 0 : i32
    return %arg0, %c0_i32 : i32, i32
  }
  func.func @transform_1(%arg0: i32) -> (i32, i32) {
    %c0_i32 = arith.constant 0 : i32
    %c0_i32_0 = arith.constant 0 : i32
    return %arg0, %c0_i32 : i32, i32
  }
  func.func @transform_2(%arg0: i32) -> (i32, i32) {
    %c0_i32 = arith.constant 0 : i32
    %c0_i32_0 = arith.constant 0 : i32
    %c0_i32_1 = arith.constant 0 : i32
    return %c0_i32, %c0_i32_0 : i32, i32
  }
  func.func @transform_3(%arg0: i32) -> (i32, i32) {
    %c0_i32 = arith.constant 0 : i32
    %c0_i32_0 = arith.constant 0 : i32
    %c0_i32_1 = arith.constant 0 : i32
    return %c0_i32, %c0_i32_0 : i32, i32
  }
  func.func @transform_4(%arg0: i32) -> (i32, i32) {
    %c0_i32 = arith.constant 0 : i32
    %c0_i32_0 = arith.constant 0 : i32
    %c0_i32_1 = arith.constant 0 : i32
    return %c0_i32, %c0_i32_0 : i32, i32
  }
  func.func @transform_5(%arg0: i32) -> (i32, i32) {
    %c0_i32 = arith.constant 0 : i32
    %c0_i32_0 = arith.constant 0 : i32
    %c0_i32_1 = arith.constant 0 : i32
    return %c0_i32, %c0_i32_0 : i32, i32
  }
  func.func @transform_6(%arg0: i32) -> (i32, i32) {
    %c0_i32 = arith.constant 0 : i32
    %c0_i32_0 = arith.constant 0 : i32
    %c0_i32_1 = arith.constant 0 : i32
    return %c0_i32, %c0_i32_0 : i32, i32
  }
  func.func @transform_7(%arg0: i32) -> (i32, i32) {
    %c0_i32 = arith.constant 0 : i32
    %c0_i32_0 = arith.constant 0 : i32
    return %arg0, %c0_i32 : i32, i32
  }
}

</mosaic_0001>

<bundles_post_ra>
// kernel: tpu_custom_call.1
= control target key start
LH: loop header
LB: loop body
LE: loop exit
PB: predicated region body
PF: predicated region fallthrough
CT: control target
= control target key end

     0   :  { %12 = vsyncpa [#allocation3], 0  ;;  %s1290_s24 = smov 0   ;;  %s1557_s0 = inlined_call_operand.vmem [shape: s32[64,3], index: 0, kind: input, shape index: {}]   ;;  %s1558_s1 = inlined_call_operand.vmem [shape: f32[64,4], index: 1, kind: input, shape index: {}]   ;;  %s1559_s2 = inlined_call_operand.hbm [shape: f32[24,256], index: 2, kind: input, shape index: {}]   ;;  %s1560_s3 = inlined_call_operand.vmem [shape: f32[4,256], index: 3, kind: input, shape index: {}]   ;;  %s1561_s4 = inlined_call_operand.vmem [shape: f32[256,128], index: 4, kind: input, shape index: {}]   ;;  %s1562_s5 = inlined_call_operand.vmem [shape: f32[128,5], index: 5, kind: input, shape index: {}]   ;;  %s1563_s6 = inlined_call_operand.vmem [shape: f32[3,256], index: 6, kind: input, shape index: {}]   ;;  %s1564_s7 = inlined_call_operand.vmem [shape: f32[64,5], index: 7, kind: output, shape index: {}]  }
   0x1 LB: > { %s956_s25 = sadd.s32 4294967295, %s1241_s24   ;;  %p958_p0 = scmp.ge.s32.totalorder %s1241_s24, 1  ;;  %s1241_s24 = sphi %s1290_s24, %s18_s24  }
   0x2   : > { %p206_p1 = scmp.lt.s32.totalorder %s1241_s24, 3  ;;  %s1243_s26 = smov [#allocation2]  }
   0x3   : > { %s218_s27 = sshll.u32 %s1243_s26, 4  ;;  %p1304_p3 = scmp.eq.s32.totalorder %s956_s25, 0  ;;  %s219_s27 = int_to_ptr.vmem [resolvable:$true] %s218_s27 }
   0x4   : > { %p1298_p2 = pnand %p958_p0, %p206_p1  ;;  %s1203_s10 = scalar_lea.hbm %s1559_s2, 768 }
   0x5   : > { %s1569_s29 = scalar_select %p1304_p3, 1, 0 }
   0x6   : > { %s1568_s28 = scalar_select %p1298_p2, 1, 0 }
   0x7   : > { %p1169_p4 = pneg %p1298_p2  ;;  %p1204_p6 = scmp.ne.s32.totalorder %s1559_s2, %s1203_s10 }
   0x8   : > { %p1210_p10 = scmp.lt.u32.totalorder %s1203_s10, %s1559_s2 }
   0x9   : > { %p1312_p5 = pnand %p1304_p3, %p1169_p4 }
   0xb   : > { %p1205_p7 = pneg %p1312_p5 }
   0xd   : > { %p1206_p8 = pnand %p1205_p7, %p1204_p6 }
   0xf   : > { %p1207_p9 = pneg %p1206_p8 }
  0x11   : > { %p1212_p11 = pnand %p1210_p10, %p1207_p9 }
  0x13   : > { %1215 = shalt.err (!%p1212_p11)
}
  0x14   : > { %s1216_s15 = scalar_lea.vmem %s219_s27, 768  ;;  %p1224_p1 = scmp.lt.s32.totalorder %s219_s27, %s219_s27 }
  0x15   : > { %p1217_p12 = scmp.ne.s32.totalorder %s219_s27, %s1216_s15  ;;  %p1225_p4 = scmp.lt.s32.totalorder %s1216_s15, %s1216_s15 }
  0x17   : > { %p1219_p13 = pnand %p1217_p12, %p1205_p7  ;;  %p1226_p3 = por %p1225_p4, %p1224_p1 }
  0x19   : > { %p1220_p0 = pneg %p1219_p13 }
  0x1b   : > { %p1227_p2 = pnand %p1226_p3, %p1220_p0 }
  0x1d   : > { %1230 = shalt.err (!%p1227_p2)
}
  0x1e   : > { %s1244_s16 = smov 256   ;;  %s1245_s17 = smov 16  }
  0x1f   : > { %1172 = dma.hbm_to_vmem [thread:$0]  (!%p1312_p5), %s1559_s2, 768, %s219_s27, [#allocation3], %s1244_s16, %s1244_s16, %s1245_s17  }
  0x20   : > { %p1571_p6 = scmp.ne.s32.totalorder %s1568_s28, 0 }
  0x21   : > { %p1572_p8 = scmp.ne.s32.totalorder (!%p1571_p6), %s1569_s29, 0 }
  0x22   : > { %264 = sbr.rel (%p1571_p6) target bundleno = 865 (0x361), region = 48 }
  0x29   : > { %1236 = dma.done.wait (%p1572_p8), [#allocation3], 768  }
  0x2a   : > { %1238 = vsyncadd (%p1572_p8), [#allocation3], 4294966528  ;;  %s963_s20 = sshll.u32 %s956_s25, 2  ;;  %v1246_v0 = vmov 2   ;;  %v1247_v1 = vmov 0   ;;  %v390_v3 = vld [vmem:[#allocation2 + $0x8] sm:$0xff]  ;;  %v323_v58 = vlaneseq }
  0x2b   : > { %1192 = vset.pattern.permute.xlu1 %v1246_v0  ;;  %1190 = vset.pattern.permute.xlu0 %v1247_v1  ;;  %p302_p2 = scmp.lt.s32.totalorder %s963_s20, 7  ;;  %v392_v4 = vld [vmem:[#allocation2 + $0x18] sm:$0xff]  ;;  %v389_v6 = vld [vmem:[#allocation2] sm:$0xff]  ;;  %v391_v7 = vld [vmem:[#allocation2 + $0x10] sm:$0xff]  ;;  %v1248_v10 = vmov 1   ;;  %vm415_vm0 = vcmask 1043456  }
  0x2c   : > { %v1089_v5 = vpack.c.bf16 %v392_v4, %v390_v3  ;;  %v1091_v9 = vpack.c.bf16 %v391_v7, %v389_v6  ;;  %v399_v11 = vld [vmem:[%s1560_s3] sm:$0xff]  ;;  %v394_v13 = vld [vmem:[#allocation2 + $0x28] sm:$0xff]  ;;  %v1249_v14 = vmov 0.0   ;;  %v393_v15 = vld [vmem:[#allocation2 + $0x20] sm:$0xff]  ;;  %vm402_vm1 = vcmask 31744  }
  0x2d   : > { %s1574_s20 = smov (!%p302_p2, %s963_s20), 7  ;;  %v401_v12 = vcombine.high %v399_v11, %v399_v11  ;;  %484 = vmatprep.mubr.f32.mxu1 %v1249_v14  ;;  %586 = vmatprep.mubr.f32.mxu0 %v1249_v14  ;;  %v655_v22 = vld [vmem:[%s1561_s4 + $0x80] sm:$0xff]  ;;  %v656_v23 = vld [vmem:[%s1561_s4 + $0x88] sm:$0xff]  ;;  %v657_v27 = vld [vmem:[%s1561_s4 + $0x90] sm:$0xff]  ;;  %v324_v61 = vand.u32 127, %v323_v58  ;;  %vm509_vm6 = vcmask 195584  }
  0x2e   : > { %s1341_s21 = sshll.u32 %s1574_s20, 3  ;;  %1090 = vmatprep.subr.bf16.mxu0 %v1089_v5  ;;  %v639_v24 = vld [vmem:[%s1561_s4] sm:$0xff]  ;;  %v1093_v25 = vpack.c.bf16 %v656_v23, %v655_v22  ;;  %v640_v26 = vld [vmem:[%s1561_s4 + $0x8] sm:$0xff]  ;;  %v658_v28 = vld [vmem:[%s1561_s4 + $0x98] sm:$0xff] }
  0x2f   : > { %s1347_s26 = scalar_lea.vmem %s1557_s0, %s1341_s21  ;;  %1092 = vmatpush1.bf16.msra.mxu0 %v1091_v9  ;;  %973 = vmatprep.subr.msk.mxu1 %vm415_vm0, %v401_v12  ;;  %s1358_s30 = scalar_lea.vmem %s1558_s1, %s1341_s21  ;;  %v1095_v29 = vpack.c.bf16 %v640_v26, %v639_v24  ;;  %v1097_v30 = vpack.c.bf16 %v658_v28, %v657_v27  ;;  %v641_v31 = vld [vmem:[%s1561_s4 + $0x10] sm:$0xff]  ;;  %v642_v32 = vld [vmem:[%s1561_s4 + $0x18] sm:$0xff]  ;;  %v659_v33 = vld [vmem:[%s1561_s4 + $0xa0] sm:$0xff] }
  0x30   : > { %v319_v2 = vld [vmem:[%s1347_s26] sm:$0xff]  ;;  %v320_v8 = vld [vmem:[%s1347_s26 + $0x8] sm:$0xff]  ;;  %526 = vmatprep.subr.mxu0 %v394_v13  ;;  %974 = vmatpush1.msk.msra.mxu1 %vm415_vm0, %v399_v11  ;;  %v321_v17 = vld [vmem:[%s1347_s26 + $0x10] sm:$0xff]  ;;  %v1099_v35 = vpack.c.bf16 %v642_v32, %v641_v31 }
  0x31   : > { %362 = vperm.xlu1 %1192, %v319_v2   ;;  %326 = vperm.xlu0 %1190, %v319_v2   ;;  %v395_v16 = vld [vmem:[%s1358_s30] sm:$0xff]  ;;  %v396_v18 = vld [vmem:[%s1358_s30 + $0x8] sm:$0xff]  ;;  %v322_v19 = vld [vmem:[%s1347_s26 + $0x18] sm:$0xff] }
  0x32   : > { %975 = vmatmul.mubr.msk.f32.vlgmr.msra.gmra.mrb[0].mxu1 %vm402_vm1, %v395_v16  ;;  %v397_v20 = vld [vmem:[%s1358_s30 + $0x10] sm:$0xff]  ;;  %v398_v21 = vld [vmem:[%s1358_s30 + $0x18] sm:$0xff]  ;;  %1094 = vmatprep.subr.bf16.mxu1 %v1093_v25  ;;  %v660_v34 = vld [vmem:[%s1561_s4 + $0xa8] sm:$0xff]  ;;  %s317_s30 = scalar_lea.vmem %s1564_s7, %s1341_s21 }
  0x33   : > { %527 = vmatpush1.msra.mxu0 %v393_v15  ;;  %490 = vmatprep.mubr.f32.mxu1 %v1249_v14  ;;  %v1101_v36 = vpack.c.bf16 %v660_v34, %v659_v33  ;;  %v643_v37 = vld [vmem:[%s1561_s4 + $0x20] sm:$0xff]  ;;  %v644_v38 = vld [vmem:[%s1561_s4 + $0x28] sm:$0xff]  ;;  %v661_v39 = vld [vmem:[%s1561_s4 + $0xb0] sm:$0xff] }
  0x34   : > { %1096 = vmatpush3.bf16.msra.mxu1 %v1095_v29  ;;  %v662_v40 = vld [vmem:[%s1561_s4 + $0xb8] sm:$0xff]  ;;  %v1103_v41 = vpack.c.bf16 %v644_v38, %v643_v37  ;;  %v645_v43 = vld [vmem:[%s1561_s4 + $0x30] sm:$0xff]  ;;  %v663_v45 = vld [vmem:[%s1561_s4 + $0xc0] sm:$0xff] }
  0x35   : > { %1193 = vset.pattern.permute.xlu1 %v1247_v1  ;;  %1191 = vset.pattern.permute.xlu0 %v1248_v10  ;;  %v1105_v42 = vpack.c.bf16 %v662_v40, %v661_v39  ;;  %v646_v44 = vld [vmem:[%s1561_s4 + $0x38] sm:$0xff]  ;;  %v664_v46 = vld [vmem:[%s1561_s4 + $0xc8] sm:$0xff]  ;;  %v647_v49 = vld [vmem:[%s1561_s4 + $0x40] sm:$0xff] }
  0x36   : > { %329 = vperm.xlu1 %1193, %v320_v8   ;;  %342 = vperm.xlu0 %1191, %v319_v2   ;;  %v1107_v47 = vpack.c.bf16 %v646_v44, %v645_v43  ;;  %v1109_v48 = vpack.c.bf16 %v664_v46, %v663_v45  ;;  %v648_v50 = vld [vmem:[%s1561_s4 + $0x48] sm:$0xff]  ;;  %v665_v51 = vld [vmem:[%s1561_s4 + $0xd0] sm:$0xff]  ;;  %v666_v52 = vld [vmem:[%s1561_s4 + $0xd8] sm:$0xff] }
  0x37   : > { %976 = vmatmul.mubr.msk.f32.gmra.mrb[2].mxu1 %vm402_vm1, %v396_v18  ;;  %1098 = vmatprep.subr.bf16.mxu1 %v1097_v30  ;;  %v1111_v53 = vpack.c.bf16 %v648_v50, %v647_v49  ;;  %v1113_v54 = vpack.c.bf16 %v666_v52, %v665_v51  ;;  %v649_v55 = vld [vmem:[%s1561_s4 + $0x50] sm:$0xff]  ;;  %v650_v56 = vld [vmem:[%s1561_s4 + $0x58] sm:$0xff]  ;;  %v667_v12 = vld [vmem:[%s1561_s4 + $0xe0] sm:$0xff] }
  0x38   : > { %496 = vmatprep.mubr.f32.mxu1 %v1249_v14  ;;  %1100 = vmatpush3.bf16.msra.mxu1 %v1099_v35  ;;  %v1115_v57 = vpack.c.bf16 %v650_v56, %v649_v55  ;;  %v668_v13 = vld [vmem:[%s1561_s4 + $0xe8] sm:$0xff]  ;;  %v651_v16 = vld [vmem:[%s1561_s4 + $0x60] sm:$0xff]  ;;  %v669_v18 = vld [vmem:[%s1561_s4 + $0xf0] sm:$0xff] }
  0x39   : > { %1102 = vmatprep.subr.bf16.mxu1 %v1101_v36  ;;  %v1117_v15 = vpack.c.bf16 %v668_v13, %v667_v12  ;;  %v653_v22 = vld [vmem:[%s1561_s4 + $0x70] sm:$0xff]  ;;  %v654_v23 = vld [vmem:[%s1561_s4 + $0x78] sm:$0xff]  ;;  %v765_v32 = vld [vmem:[%s1562_s5] sm:$0xff] }
  0x3a   : > { %1194 = vset.pattern.permute.xlu1 %v1248_v10  ;;  %1195 = vset.pattern.permute.xlu0 %v1246_v0  ;;  %v1123_v25 = vpack.c.bf16 %v654_v23, %v653_v22  ;;  %v766_v33 = vld [vmem:[%s1562_s5 + $0x8] sm:$0xff]  ;;  %v767_v34 = vld [vmem:[%s1562_s5 + $0x10] sm:$0xff]  ;;  %v768_v36 = vld [vmem:[%s1562_s5 + $0x18] sm:$0xff] }
  0x3b   : > { %345 = vperm.xlu1 %1194, %v320_v8   ;;  %365 = vperm.xlu0 %1195, %v320_v8   ;;  %v1125_v35 = vpack.c.bf16 %v766_v33, %v765_v32  ;;  %v1129_v37 = vpack.c.bf16 %v768_v36, %v767_v34  ;;  %v769_v38 = vld [vmem:[%s1562_s5 + $0x20] sm:$0xff]  ;;  %v770_v39 = vld [vmem:[%s1562_s5 + $0x28] sm:$0xff]  ;;  %v776_v22 = vld [vmem:[%s1562_s5 + $0x58] sm:$0xff] }
  0x3c   : > { %977 = vmatmul.mubr.msk.f32.gmra.mrb[4].mxu1 %vm402_vm1, %v397_v20  ;;  %v1133_v40 = vpack.c.bf16 %v770_v39, %v769_v38  ;;  %v773_v44 = vld [vmem:[%s1562_s5 + $0x40] sm:$0xff]  ;;  %v774_v45 = vld [vmem:[%s1562_s5 + $0x48] sm:$0xff] }
  0x3d   : > { %502 = vmatprep.mubr.f32.mxu1 %v1249_v14  ;;  %1104 = vmatpush3.bf16.msra.mxu1 %v1103_v41  ;;  %v771_v41 = vld [vmem:[%s1562_s5 + $0x30] sm:$0xff]  ;;  %v1141_v46 = vpack.c.bf16 %v774_v45, %v773_v44  ;;  %v611_v49 = vld [vmem:[%s1563_s6] ss:$4 sm:$0x3] }
  0x3e   : > { %1106 = vmatprep.subr.bf16.mxu1 %v1105_v42  ;;  %1126 = vmatprep.subr.bf16.mxu0 %v1125_v35  ;;  %v772_v42 = vld [vmem:[%s1562_s5 + $0x38] sm:$0xff] }
  0x3f   : > { %1196 = vset.pattern.permute.xlu1 %v1247_v1  ;;  %368 = vperm.xlu0 %1195, %v321_v17   ;;  %v1137_v43 = vpack.c.bf16 %v772_v42, %v771_v41 }
  0x40   : > { %332 = vperm.xlu1 %1196, %v321_v17   ;;  %978 = vmatmul.mubr.msk.f32.gmra.mrb[6].mxu1 %vm402_vm1, %v398_v21 }
  0x41   : > { %1108 = vmatpush3.bf16.msra.mxu1 %v1107_v47  ;;  %v614_v47 = vshrl.u32 %v323_v58, 7 }
  0x42   : > { %1110 = vmatprep.subr.bf16.mxu1 %v1109_v48 }
  0x43   : > { %1199 = vset.pattern.permute.xlu0 %v1248_v10  ;;  %v615_v48 = vsub.s32 0, %v614_v47  ;;  %v619_v50 = vsub.s32 1, %v614_v47 }
  0x44   : > { %1197 = vset.pattern.permute.xlu1 %v1248_v10  ;;  %351 = vperm.xlu0 %1199, %v322_v19  }
  0x45   : > { %348 = vperm.xlu1 %1197, %v321_v17   ;;  %1112 = vmatpush3.bf16.msra.mxu1 %v1111_v53  ;;  %v652_v17 = vld [vmem:[%s1561_s4 + $0x68] sm:$0xff]  ;;  %v616_v51 = vrot.slane %v611_v49, %v615_v48  ;;  %v620_v53 = vrot.slane %v611_v49, %v619_v50 }
  0x46   : > { %1114 = vmatprep.subr.bf16.mxu1 %v1113_v54 }
  0x48   : > { %1201 = vset.pattern.permute.xlu0 %v1246_v0 }
  0x49   : > { %1198 = vset.pattern.permute.xlu1 %v1247_v1  ;;  %1116 = vmatpush3.bf16.msra.mxu1 %v1115_v57 }
  0x4a   : > { %335 = vperm.xlu1 %1198, %v322_v19   ;;  %1118 = vmatprep.subr.bf16.mxu1 %v1117_v15 }
  0x4e   : > { %1200 = vset.pattern.permute.xlu1 %v1246_v0 }
  0x4f   : > { %371 = vperm.xlu1 %1200, %v322_v19   ;;  %v670_v19 = vld [vmem:[%s1561_s4 + $0xf8] sm:$0xff] }
  0x50   : > { %v1121_v21 = vpack.c.bf16 %v670_v19, %v669_v18 }
  0xb0   : > { %v363_v59 = vpop.permute.xlu1 %362  ;;  %v327_v60 = vpop.permute.xlu0 %326 }
  0xb1   : > { %vm337_vm2 = vcmp.eq.s32.totalorder %v324_v61, %v327_v60  ;;  %vm373_vm4 = vcmp.eq.s32.totalorder %v324_v61, %v363_v59 }
  0xb5   : > { %v330_v62 = vpop.permute.xlu1 %329  ;;  %v343_v63 = vpop.permute.xlu0 %342 }
  0xb6   : > { %vm353_vm3 = vcmp.eq.s32.totalorder %v324_v61, %v343_v63  ;;  %vm338_vm8 = vcmp.eq.s32.totalorder %v324_v61, %v330_v62 }
  0xb7   : > { %vm357_vm5 = vmor %vm337_vm2, %vm353_vm3 }
  0xb8   : > { %vm377_vm7 = vmor %vm357_vm5, %vm373_vm4 }
  0xb9   : > { %v969_v0 = vsel %vm377_vm7, 1.0, %v1249_v14 }
  0xba   : > { %v346_v1 = vpop.permute.xlu1 %345  ;;  %979 = vmatmul.mubr.msk.f32.vlgmr.msra.gmra.mrb[0].mxu0 %vm509_vm6, %v969_v0  ;;  %v366_v2 = vpop.permute.xlu0 %365 }
  0xbb   : > { %vm354_vm9 = vcmp.eq.s32.totalorder %v324_v61, %v346_v1  ;;  %vm374_vm10 = vcmp.eq.s32.totalorder %v324_v61, %v366_v2  ;;  %592 = vmatprep.mubr.f32.mxu0 %v1249_v14  ;;  %1128 = vmatpush3.bf16.msra.mxu0 %v1125_v35 }
  0xbc   : > { %vm358_vm11 = vmor %vm338_vm8, %vm354_vm9  ;;  %1130 = vmatprep.subr.bf16.mxu0 %v1129_v37 }
  0xbd   : > { %vm378_vm12 = vmor %vm358_vm11, %vm374_vm10 }
  0xbe   : > { %v970_v3 = vsel %vm378_vm12, 1.0, %v1249_v14  ;;  %v369_v5 = vpop.permute.xlu0 %368 }
  0xbf   : > { %v333_v4 = vpop.permute.xlu1 %332  ;;  %980 = vmatmul.mubr.msk.f32.gmra.mrb[2].mxu0 %vm509_vm6, %v970_v3  ;;  %vm375_vm13 = vcmp.eq.s32.totalorder %v324_v61, %v369_v5 }
  0xc0   : > { %598 = vmatprep.mubr.f32.mxu0 %v1249_v14  ;;  %vm339_vm14 = vcmp.eq.s32.totalorder %v324_v61, %v333_v4  ;;  %1132 = vmatpush3.bf16.msra.mxu0 %v1129_v37 }
  0xc1   : > { %1134 = vmatprep.subr.bf16.mxu0 %v1133_v40 }
  0xc3   : > { %v352_v9 = vpop.permute.xlu0 %351 }
  0xc4   : > { %v349_v6 = vpop.permute.xlu1 %348  ;;  %vm356_vm3 = vcmp.eq.s32.totalorder %v324_v61, %v352_v9  ;;  %1136 = vmatpush3.bf16.msra.mxu0 %v1133_v40 }
  0xc5   : > { %vm355_vm15 = vcmp.eq.s32.totalorder %v324_v61, %v349_v6  ;;  %1138 = vmatprep.subr.bf16.mxu0 %v1137_v43 }
  0xc6   : > { %vm359_vm0 = vmor %vm339_vm14, %vm355_vm15 }
  0xc7   : > { %vm379_vm1 = vmor %vm359_vm0, %vm375_vm13 }
  0xc8   : > { %v971_v7 = vsel %vm379_vm1, 1.0, %v1249_v14  ;;  %1140 = vmatpush3.bf16.msra.mxu0 %v1137_v43 }
  0xc9   : > { %v336_v8 = vpop.permute.xlu1 %335  ;;  %981 = vmatmul.mubr.msk.f32.gmra.mrb[4].mxu0 %vm509_vm6, %v971_v7  ;;  %1142 = vmatprep.subr.bf16.mxu0 %v1141_v46 }
  0xca   : > { %604 = vmatprep.mubr.f32.mxu0 %v1249_v14  ;;  %vm340_vm2 = vcmp.eq.s32.totalorder %v324_v61, %v336_v8 }
  0xcb   : > { %vm360_vm4 = vmor %vm340_vm2, %vm356_vm3 }
  0xcc   : > { %1144 = vmatpush3.bf16.msra.mxu0 %v1141_v46 }
  0xce   : > { %v372_v10 = vpop.permute.xlu1 %371 }
  0xcf   : > { %vm376_vm5 = vcmp.eq.s32.totalorder %v324_v61, %v372_v10 }
  0xd0   : > { %vm380_vm7 = vmor %vm360_vm4, %vm376_vm5 }
  0xd1   : > { %v972_v11 = vsel %vm380_vm7, 1.0, %v1249_v14  ;;  %v1119_v14 = vpack.c.bf16 %v652_v17, %v651_v16 }
  0xd2   : > { %982 = vmatmul.mubr.msk.f32.gmra.mrb[6].mxu0 %vm509_vm6, %v972_v11  ;;  %vm871_vm6 = vcmask 39936  }
  0xd3   : > { %1120 = vmatpush3.bf16.msra.mxu1 %v1119_v14 }
  0xd4   : > { %1122 = vmatprep.subr.bf16.mxu1 %v1121_v21  ;;  %v775_v21 = vld [vmem:[%s1562_s5 + $0x50] sm:$0xff] }
  0xd5   : > { %v1145_v23 = vpack.c.bf16 %v776_v22, %v775_v21 }
  0xd7   : > { %1124 = vmatpush3.bf16.msra.mxu1 %v1123_v25  ;;  %1146 = vmatprep.subr.bf16.mxu0 %v1145_v23  ;;  %v778_v25 = vld [vmem:[%s1562_s5 + $0x68] sm:$0xff] }
  0xd8   : > { %1148 = vmatpush3.bf16.msra.mxu0 %v1145_v23 }
 0x105   : > { %v486_v20 = vpop.f32.mrb[0].mxu1 }
 0x106   : > { %v488_v24 = vpop.f32.mrb[1].mxu1 }
 0x10a   : > { %v492_v26 = vpop.f32.mrb[2].mxu1 }
 0x10b   : > { %v494_v27 = vpop.f32.mrb[3].mxu1 }
 0x10f   : > { %v498_v28 = vpop.f32.mrb[4].mxu1 }
 0x110   : > { %v500_v29 = vpop.f32.mrb[5].mxu1 }
 0x113   : > { %v1486_v30 = vpop.f32.mrb[6].mxu1 }
 0x114   : > { %v1488_v31 = vpop.f32.mrb[7].mxu1 }
 0x18d   : > { %v588_v52 = vpop.f32.mrb[0].mxu0 }
 0x18e   : > { %v589_v54 = vadd.f32 %v588_v52, %v486_v20  ;;  %v590_v55 = vpop.f32.mrb[1].mxu0 }
 0x18f   : > { %v591_v56 = vadd.f32 %v590_v55, %v488_v24  ;;  %v777_v24 = vld [vmem:[%s1562_s5 + $0x60] sm:$0xff] }
 0x190   : > { %v623_v57 = vadd.f32 %v616_v51, %v589_v54 }
 0x191   : > { %v624_v59 = vadd.f32 %v620_v53, %v591_v56 }
 0x192   : > { %v594_v60 = vpop.f32.mrb[2].mxu0  ;;  %v631_v0 = vmax.f32 %v623_v57, 0.0 }
 0x193   : > { %v632_v61 = vmax.f32 %v624_v59, 0.0  ;;  %v595_v62 = vadd.f32 %v594_v60, %v492_v26  ;;  %v596_v63 = vpop.f32.mrb[3].mxu0  ;;  %v1149_v26 = vpack.c.bf16 %v778_v25, %v777_v24 }
 0x194   : > { %v597_v58 = vadd.f32 %v596_v63, %v494_v27  ;;  %v779_v27 = vld [vmem:[%s1562_s5 + $0x70] sm:$0xff] }
 0x195   : > { %v625_v1 = vadd.f32 %v616_v51, %v595_v62  ;;  %740 = vmatprep.mubr.f32.mxu1 %v632_v61  ;;  %1150 = vmatprep.subr.bf16.mxu0 %v1149_v26 }
 0x196   : > { %v626_v2 = vadd.f32 %v620_v53, %v597_v58  ;;  %741 = vmatmul.mubr.f32.vlgmr.msra.gmra.mrb[8].mxu1 %v631_v0  ;;  %1152 = vmatpush3.bf16.msra.mxu0 %v1149_v26 }
 0x197   : > { %v633_v4 = vmax.f32 %v625_v1, 0.0 }
 0x198   : > { %v634_v3 = vmax.f32 %v626_v2, 0.0 }
 0x19a   : > { %745 = vmatprep.mubr.f32.mxu1 %v634_v3 }
 0x19b   : > { %746 = vmatmul.mubr.f32.gmra.mrb[10].mxu1 %v633_v4 }
 0x19c   : > { %v600_v5 = vpop.f32.mrb[4].mxu0 }
 0x19d   : > { %v601_v6 = vadd.f32 %v600_v5, %v498_v28  ;;  %v602_v7 = vpop.f32.mrb[5].mxu0  ;;  %v780_v28 = vld [vmem:[%s1562_s5 + $0x78] sm:$0xff] }
 0x19e   : > { %v603_v8 = vadd.f32 %v602_v7, %v500_v29  ;;  %v1153_v29 = vpack.c.bf16 %v780_v28, %v779_v27 }
 0x19f   : > { %v627_v9 = vadd.f32 %v616_v51, %v601_v6 }
 0x1a0   : > { %v628_v10 = vadd.f32 %v620_v53, %v603_v8  ;;  %1154 = vmatprep.subr.bf16.mxu0 %v1153_v29 }
 0x1a1   : > { %v635_v12 = vmax.f32 %v627_v9, 0.0  ;;  %1156 = vmatpush3.bf16.msra.mxu0 %v1153_v29 }
 0x1a2   : > { %v636_v11 = vmax.f32 %v628_v10, 0.0 }
 0x1a4   : > { %750 = vmatprep.mubr.f32.mxu1 %v636_v11 }
 0x1a5   : > { %v606_v13 = vpop.f32.mrb[6].mxu0  ;;  %751 = vmatmul.mubr.f32.gmra.mrb[12].mxu1 %v635_v12 }
 0x1a6   : > { %v607_v15 = vadd.f32 %v606_v13, %v1486_v30  ;;  %v608_v16 = vpop.f32.mrb[7].mxu0 }
 0x1a7   : > { %v609_v17 = vadd.f32 %v608_v16, %v1488_v31  ;;  %v983_v31 = vld [vmem:[%s1563_s6 + $0x1] ss:$0 sm:$0xff] }
 0x1a8   : > { %v629_v14 = vadd.f32 %v616_v51, %v607_v15  ;;  %v984_v51 = vld [vmem:[%s1563_s6 + $0x2] ss:$0 sm:$0xff] }
 0x1a9   : > { %v630_v18 = vadd.f32 %v620_v53, %v609_v17 }
 0x1aa   : > { %v637_v20 = vmax.f32 %v629_v14, 0.0 }
 0x1ab   : > { %v638_v19 = vmax.f32 %v630_v18, 0.0 }
 0x1ad   : > { %755 = vmatprep.mubr.f32.mxu1 %v638_v19 }
 0x1ae   : > { %756 = vmatmul.mubr.f32.gmra.mrb[14].mxu1 %v637_v20 }
 0x269   : > { %v1019_v30 = vpop.f32.mrb[8].mxu1 }
 0x26a   : > { %v1020_v32 = vpop.f32.mrb[9].mxu1 }
 0x26b   : > { %v1021_v33 = vadd.f32 %v1020_v32, %v1019_v30 }
 0x26d   : > { %v743_v34 = vadd.f32 %v1021_v33, %v983_v31 }
 0x26e   : > { %v1022_v35 = vpop.f32.mrb[10].mxu1 }
 0x26f   : > { %v761_v36 = vmax.f32 %v743_v34, 0.0  ;;  %v1023_v37 = vpop.f32.mrb[11].mxu1 }
 0x270   : > { %v1024_v38 = vadd.f32 %v1023_v37, %v1022_v35 }
 0x271   : > { %1083 = vmatprep.mubr.f32.mxu0 %v761_v36 }
 0x272   : > { %v748_v39 = vadd.f32 %v1024_v38, %v983_v31 }
 0x274   : > { %v762_v40 = vmax.f32 %v748_v39, 0.0 }
 0x276   : > { %1084 = vmatmul.mubr.f32.vlgmr.msra.gmra.mrb[8].mxu0 %v762_v40 }
 0x278   : > { %v1025_v41 = vpop.f32.mrb[12].mxu1 }
 0x279   : > { %v1026_v42 = vpop.f32.mrb[13].mxu1 }
 0x27a   : > { %v1027_v43 = vadd.f32 %v1026_v42, %v1025_v41 }
 0x27c   : > { %v753_v44 = vadd.f32 %v1027_v43, %v983_v31 }
 0x27e   : > { %v763_v45 = vmax.f32 %v753_v44, 0.0 }
 0x280   : > { %1086 = vmatprep.mubr.f32.mxu0 %v763_v45 }
 0x281   : > { %v1028_v46 = vpop.f32.mrb[14].mxu1 }
 0x282   : > { %v1029_v47 = vpop.f32.mrb[15].mxu1 }
 0x283   : > { %v1030_v48 = vadd.f32 %v1029_v47, %v1028_v46 }
 0x285   : > { %v758_v49 = vadd.f32 %v1030_v48, %v983_v31 }
 0x287   : > { %v764_v50 = vmax.f32 %v758_v49, 0.0 }
 0x289   : > { %1087 = vmatmul.mubr.f32.gmra.mrb[10].mxu0 %v764_v50 }
 0x349   : > { %v1085_v52 = vpop.f32.mrb[8].mxu0 }
 0x34a   : > { %v852_v53 = vpop.f32.mrb[9].mxu0  ;;  %v858_v55 = vadd.f32 %v1085_v52, %v984_v51 }
 0x34b   : > { %v853_v54 = vadd.f32 %v984_v51, %v852_v53 }
 0x34c   : > { %873 = vst.msk [vmem:[%s317_s30 + $0x8] sm:$0xff] %vm871_vm6, %v858_v55 }
 0x34d   : > { %872 = vst.msk [vmem:[%s317_s30] sm:$0xff] %vm871_vm6, %v853_v54 }
 0x35c   : > { %v1088_v56 = vpop.f32.mrb[10].mxu0 }
 0x35d   : > { %v862_v57 = vpop.f32.mrb[11].mxu0  ;;  %v868_v60 = vadd.f32 %v1088_v56, %v984_v51 }
 0x35e   : > { %v863_v59 = vadd.f32 %v984_v51, %v862_v57 }
 0x35f   : > { %875 = vst.msk [vmem:[%s317_s30 + $0x18] sm:$0xff] %vm871_vm6, %v868_v60 }
 0x360   : > { %874 = vst.msk [vmem:[%s317_s30 + $0x10] sm:$0xff] %vm871_vm6, %v863_v59 }
 0x361 PF: > { %s18_s24 = sadd.s32 1, %s1241_s24  }
 0x362   : > { %p15_p3 = scmp.ge.s32.totalorder %s18_s24, 4  }
 0x364   :  { %17 = sbr.rel (!%p15_p3) target bundleno = 1 (0x1), region = 86 }
 0x36b   :  { %898 = vsyncpa [#allocation3], 1 }
 0x36c   :  { %900 = vsyncpa [#allocation3 + $0x1], 1 }

</bundles_post_ra>
